<compile_context>
chip_gen: v7x
topology: tpu7x:2x2x1
jax: 0.10.0
libtpu: 0.0.40
codegen_flags: <defaults>
</compile_context>

<pallas_src>
import functools

import jax
import jax.numpy as jnp
from jax.experimental import pallas as pl
from jax.experimental.pallas import tpu as pltpu


_VMEM_LIMIT = 32 * 1024 * 1024  # safe on v5e/v6e (128 MiB) and v7x (64 MiB physical)


# ------------------------------- helpers -------------------------------------


def _round_up(v, m):
    return (v + m - 1) // m * m


def _pad2(a, rows, cols):
    return jnp.pad(a, ((0, rows - a.shape[0]), (0, cols - a.shape[1])))


def _choose_tiling(num_nodes):
    """Return (n_pad, row_tile, reduction_tile) for the A_hat aggregation grid.

    Small graphs: one whole-extent block (block == full dim satisfies the
    (8,128) rule).  Large graphs: TM=256 row tiles (fills v6e/v7x 256x256 MXUs)
    and TK=512 reduction tiles streamed from HBM.
    """
    n8 = _round_up(num_nodes, 8)
    if n8 <= 512:
        return n8, n8, n8
    tm, tk = 256, 512
    return _round_up(num_nodes, tk), tm, tk


# --------------------------- GCN layer kernel --------------------------------


def _build_gcn_layer_kernel(compute_dtype):
    def kernel(a_ref, h_ref, w_ref, b_ref, o_ref, acc_ref):
        k = pl.program_id(1)

        @pl.when(k == 0)
        def _():
            acc_ref[...] = jnp.zeros_like(acc_ref)

        # Aggregate-first: acc[i_tile, :] += A[i_tile, k_tile] @ H[k_tile, :]
        acc_ref[...] += jnp.dot(a_ref[...], h_ref[...],
                                preferred_element_type=jnp.float32)

        @pl.when(k == pl.num_programs(1) - 1)
        def _():
            # Feature transform + bias + ReLU (f32 epilogue), once per row tile.
            y = jnp.dot(acc_ref[...].astype(compute_dtype), w_ref[...],
                        preferred_element_type=jnp.float32)
            o_ref[...] = jnp.maximum(y + b_ref[...], 0.0).astype(o_ref.dtype)

    return kernel


def gcn_layer(a_hat, h, w, b, *, tm, tk, compute_dtype):
    """relu( A_hat @ (H @ W) + b ), computed as relu( (A_hat @ H) @ W + b )."""
    n_pad = a_hat.shape[0]
    f_in = h.shape[1]
    f_out = w.shape[1]
    grid = (n_pad // tm, n_pad // tk)
    return pl.pallas_call(
        _build_gcn_layer_kernel(compute_dtype),
        out_shape=jax.ShapeDtypeStruct((n_pad, f_out), compute_dtype),
        grid_spec=pltpu.PrefetchScalarGridSpec(
            num_scalar_prefetch=0,
            grid=grid,
            in_specs=[
                # A_hat streamed tile-by-tile (double-buffered by the pipeline).
                # If profiling shows exposed DMA on this stream, add
                # pipeline_mode=pl.Buffered(3) to this spec only.
                pl.BlockSpec((tm, tk), lambda i, k: (i, k)),
                pl.BlockSpec((tk, f_in), lambda i, k: (k, 0)),
                # Weights / bias stay VMEM resident across the whole grid.
                pl.BlockSpec((f_in, f_out), lambda i, k: (0, 0)),
                pl.BlockSpec((1, f_out), lambda i, k: (0, 0)),
            ],
            out_specs=pl.BlockSpec((tm, f_out), lambda i, k: (i, 0)),
            scratch_shapes=[pltpu.VMEM((tm, f_in), jnp.float32)],
        ),
        compiler_params=pltpu.CompilerParams(
            dimension_semantics=("parallel", "arbitrary"),
            vmem_limit_bytes=_VMEM_LIMIT,
        ),
    )(a_hat, h, w, b)


# ------------------- fused BN(folded) + MLP head kernel ----------------------


def _build_head_kernel(num_hidden, compute_dtype):
    def kernel(h_ref, *refs):
        o_ref = refs[-1]
        wb = refs[:-1]
        h = h_ref[...]
        k = 0
        # Hidden classifier layers: relu(H @ W + b)   (f32 epilogue)
        for _ in range(num_hidden):
            w = wb[k][...]
            b = wb[k + 1][...]
            k += 2
            y = jnp.dot(h.astype(compute_dtype), w,
                        preferred_element_type=jnp.float32)
            h = jnp.maximum(y + b, 0.0)
            # dropout(p=0.2): identity in eval mode
        # Readout (no activation) -> lane-dense store (last dim padded to 128).
        w = wb[k][...]
        b = wb[k + 1][...]
        y = jnp.dot(h.astype(compute_dtype), w,
                    preferred_element_type=jnp.float32)
        o_ref[...] = (y + b).astype(o_ref.dtype)

    return kernel


def mlp_head(h, cls_wb, readout_wb, *, tm, compute_dtype):
    n_pad, h_dim = h.shape
    o_dim = readout_wb[0].shape[1]
    flat = []
    in_specs = [pl.BlockSpec((tm, h_dim), lambda i: (i, 0))]
    for w, b in cls_wb + [readout_wb]:
        flat += [w, b]
        in_specs.append(pl.BlockSpec(w.shape, lambda i: (0, 0)))
        in_specs.append(pl.BlockSpec(b.shape, lambda i: (0, 0)))
    return pl.pallas_call(
        _build_head_kernel(len(cls_wb), compute_dtype),
        out_shape=jax.ShapeDtypeStruct((n_pad, o_dim), jnp.float32),
        grid_spec=pltpu.PrefetchScalarGridSpec(
            num_scalar_prefetch=0,
            grid=(n_pad // tm,),
            in_specs=in_specs,
            out_specs=pl.BlockSpec((tm, o_dim), lambda i: (i, 0)),
        ),
        compiler_params=pltpu.CompilerParams(
            dimension_semantics=("parallel",),
            vmem_limit_bytes=_VMEM_LIMIT,
        ),
    )(h, *flat)


# ------------------------------ graph prep -----------------------------------


def prepare_adjacency(edge_index, num_nodes, *, compute_dtype=jnp.bfloat16):
    """Dense GCN-normalized adjacency D^-1/2 (A + I) D^-1/2, built directly at
    the padded size and in the kernel compute dtype.  Build this ONCE per
    static graph, outside the per-call jitted forward."""
    n_pad, _, _ = _choose_tiling(num_nodes)
    src, dst = edge_index[0], edge_index[1]
    a = jnp.zeros((n_pad, n_pad), jnp.float32)
    a = a.at[dst, src].add(1.0)                           # messages flow src -> dst
    diag = jnp.arange(num_nodes)
    a = a.at[diag, diag].add(1.0)                         # self loops on real nodes
    deg = a.sum(axis=1)
    d_inv_sqrt = jax.lax.rsqrt(jnp.maximum(deg, 1e-12))
    a = a * d_inv_sqrt[:, None] * d_inv_sqrt[None, :]     # padded rows/cols stay 0
    return a.astype(compute_dtype)


# --------------------------------- params ------------------------------------


def init_params(key, input_dim, hidden_dim, output_dim, gnn_layers, classifier_layers):
    params = {"gnn": [], "cls": []}

    def dense(k, fin, fout):
        kw, kb = jax.random.split(k)
        scale = 1.0 / jnp.sqrt(jnp.float32(fin))
        w = jax.random.uniform(kw, (fin, fout), jnp.float32, -scale, scale)
        b = jax.random.uniform(kb, (1, fout), jnp.float32, -scale, scale)
        return {"w": w, "b": b}

    keys = jax.random.split(key, gnn_layers + classifier_layers + 2)
    ki = 0

    params["gnn"].append(dense(keys[ki], input_dim, hidden_dim)); ki += 1
    for _ in range(gnn_layers - 1):
        params["gnn"].append(dense(keys[ki], hidden_dim, hidden_dim)); ki += 1

    for _ in range(classifier_layers - 1):
        params["cls"].append(dense(keys[ki], hidden_dim, hidden_dim)); ki += 1

    params["readout"] = dense(keys[ki], hidden_dim, output_dim); ki += 1

    # Deterministic (eval-mode) BatchNorm1d parameters / running stats.
    idx = jnp.arange(hidden_dim, dtype=jnp.float32)[None, :]
    params["bn"] = {
        "gamma": 1.0 + 0.01 * idx,
        "beta": 0.05 * idx,
        "mean": 0.02 * idx,
        "var": 1.0 + 0.03 * idx,
    }
    return params


# -------------------------------- forward ------------------------------------


def gnn_forward(params, x, a_hat, *, compute_dtype=jnp.bfloat16):
    # TODO(synk): edge_weight branch would scale adjacency entries; only the
    # edge_weight=None path is exercised here (matches the reference default).
    n, f_in = x.shape
    n_pad, tm, tk = _choose_tiling(n)
    assert a_hat.shape == (n_pad, n_pad), "a_hat must come from prepare_adjacency"

    hidden = params["gnn"][0]["w"].shape[1]
    out_dim = params["readout"]["w"].shape[1]

    # ---- fold eval-mode BatchNorm1d into the first post-BN linear layer ----
    # BN(h) = h*s + t with s = gamma/sqrt(var+eps), t = beta - mean*s, so
    # BN(h) @ W + b == h @ (diag(s) W) + (t @ W + b).
    bn = params["bn"]
    inv_std = jax.lax.rsqrt(bn["var"] + 1e-5)
    s = bn["gamma"] * inv_std                # [1, hidden]
    t = bn["beta"] - bn["mean"] * s          # [1, hidden]

    cls = [dict(p) for p in params["cls"]]
    readout = dict(params["readout"])
    if cls:
        w0, b0 = cls[0]["w"], cls[0]["b"]
        cls[0] = {"w": s.reshape(-1, 1) * w0, "b": b0 + t @ w0}
    else:
        w0, b0 = readout["w"], readout["b"]
        readout = {"w": s.reshape(-1, 1) * w0, "b": b0 + t @ w0}

    # ---- padding: node rows -> n_pad; stored (lane) feature dims -> x128.
    # The raw input feature dim is only a contraction dim / accumulator width,
    # so it gets an x8 pad only (no wasted MXU flops from a 128 pad).
    f_pad = _round_up(f_in, 8)
    h_pad = _round_up(hidden, 128)
    o_pad = _round_up(out_dim, 128)

    # ---- all matmul operands cast to the compute dtype in the wrapper (not
    # in-kernel); biases stay f32 for the f32 bias+ReLU epilogues.
    x_p = _pad2(x, n_pad, f_pad).astype(compute_dtype)

    def pad_wb(p, rin, cout):
        return (_pad2(p["w"], rin, cout).astype(compute_dtype),
                _pad2(p["b"], 1, cout).astype(jnp.float32))

    gnn_wb = [pad_wb(params["gnn"][0], f_pad, h_pad)]
    gnn_wb += [pad_wb(p, h_pad, h_pad) for p in params["gnn"][1:]]
    cls_wb = [pad_wb(p, h_pad, h_pad) for p in cls]
    readout_wb = pad_wb(readout, h_pad, o_pad)

    # ---- GCN stack: each layer is one tiled pallas_call streaming A_hat.
    h = x_p
    for (w, b) in gnn_wb:
        h = gcn_layer(a_hat, h, w, b, tm=tm, tk=tk, compute_dtype=compute_dtype)
        # dropout(p=0.2): identity in eval mode

    # ---- BatchNorm (folded) + classifier MLP + readout: one fused call.
    out = mlp_head(h, cls_wb, readout_wb, tm=tm, compute_dtype=compute_dtype)

    # Padded rows hold relu(bias) junk (A_hat padded rows/cols are zero); slice.
    return out[:n, :out_dim]


# ----------------------------------- main ------------------------------------


if __name__ == "__main__":
    NUM_NODES = 16
    INPUT_DIM = 8
    HIDDEN_DIM = 32
    OUTPUT_DIM = 4
    GNN_LAYERS = 2
    CLASSIFIER_LAYERS = 2

    key = jax.random.PRNGKey(0)
    k_x, k_p = jax.random.split(key)

    x = jax.random.normal(k_x, (NUM_NODES, INPUT_DIM), jnp.float32)

    # Deterministic undirected ring graph: i <-> (i+1) mod N.
    idx = jnp.arange(NUM_NODES, dtype=jnp.int32)
    src = jnp.concatenate([idx, (idx + 1) % NUM_NODES])
    dst = jnp.concatenate([(idx + 1) % NUM_NODES, idx])
    edge_index = jnp.stack([src, dst], axis=0)          # [2, E]

    params = init_params(k_p, INPUT_DIM, HIDDEN_DIM, OUTPUT_DIM,
                         GNN_LAYERS, CLASSIFIER_LAYERS)

    # Static graph: build the normalized / padded / compute-dtype A_hat once,
    # outside the per-call forward.
    a_hat = jax.block_until_ready(
        prepare_adjacency(edge_index, NUM_NODES, compute_dtype=jnp.bfloat16))

    fwd = jax.jit(functools.partial(gnn_forward, compute_dtype=jnp.bfloat16))
    out = fwd(params, x, a_hat)
    jax.block_until_ready(out)
    assert out.shape == (NUM_NODES, OUTPUT_DIM)
    print("KERNEL_OK")
</pallas_src>

<mosaic_0001>
module attributes {stable_mosaic.version = 11 : i64} {
  func.func @kernel(%arg0: i32, %arg1: i32, %arg2: memref<16x16xbf16, #tpu.memory_space<vmem>>, %arg3: memref<16x8xbf16, #tpu.memory_space<vmem>>, %arg4: memref<8x128xbf16, #tpu.memory_space<vmem>>, %arg5: memref<1x128xf32, #tpu.memory_space<vmem>>, %arg6: memref<16x128xbf16, #tpu.memory_space<vmem>>, %arg7: memref<16x8xf32, #tpu.memory_space<vmem>>) attributes {dimension_semantics = [#tpu.dimension_semantics<parallel>, #tpu.dimension_semantics<arbitrary>], iteration_bounds = array<i64: 1, 1>, scalar_prefetch = 0 : i64, scratch_operands = 1 : i64, tpu.core_type = #tpu.core_type<tc>, window_params = [{transform_indices = @transform_0, window_bounds = array<i64: 16, 16>}, {transform_indices = @transform_1, window_bounds = array<i64: 16, 8>}, {pipeline_mode = #tpu.pipeline_mode<synchronous>, transform_indices = @transform_2, window_bounds = array<i64: 8, 128>}, {pipeline_mode = #tpu.pipeline_mode<synchronous>, transform_indices = @transform_3, window_bounds = array<i64: 1, 128>}, {transform_indices = @transform_4, window_bounds = array<i64: 16, 128>}]} {
    %c0_i32 = arith.constant 0 : i32
    %0 = arith.cmpi eq, %arg1, %c0_i32 : i32
    %1 = arith.extui %0 : i1 to i32
    %c0_i32_0 = arith.constant 0 : i32
    %2 = arith.cmpi ne, %1, %c0_i32_0 : i32
    scf.if %2 {
      %cst_10 = arith.constant 0.000000e+00 : f32
      %12 = vector.broadcast %cst_10 : f32 to vector<16x8xf32>
      %c0_11 = arith.constant 0 : index
      %c0_12 = arith.constant 0 : index
      %13 = vector.load %arg7[%c0_11, %c0_12] : memref<16x8xf32, #tpu.memory_space<vmem>>, vector<16x8xf32>
      tpu.vector_store %arg7[%c0_11, %c0_12], %12 {strides = array<i32>} : memref<16x8xf32, #tpu.memory_space<vmem>>, vector<16x8xf32>,
    } else {
    }
    %c0 = arith.constant 0 : index
    %c0_1 = arith.constant 0 : index
    %3 = vector.load %arg7[%c0, %c0_1] : memref<16x8xf32, #tpu.memory_space<vmem>>, vector<16x8xf32>
    %c0_2 = arith.constant 0 : index
    %c0_3 = arith.constant 0 : index
    %4 = vector.load %arg2[%c0_2, %c0_3] : memref<16x16xbf16, #tpu.memory_space<vmem>>, vector<16x16xbf16>
    %c0_4 = arith.constant 0 : index
    %c0_5 = arith.constant 0 : index
    %5 = vector.load %arg3[%c0_4, %c0_5] : memref<16x8xbf16, #tpu.memory_space<vmem>>, vector<16x8xbf16>
    %cst = arith.constant dense<0.000000e+00> : vector<16x8xf32>
    %6 = tpu.matmul %4, %5, %cst {dimension_numbers = #tpu.dot_dimension_numbers<[1], [0], [0], [1], [0, 0, 1, 1], [], []>} : vector<16x16xbf16>, vector<16x8xbf16>, vector<16x8xf32> -> vector<16x8xf32>
    %7 = arith.addf %3, %6 : vector<16x8xf32>
    %c0_6 = arith.constant 0 : index
    %c0_7 = arith.constant 0 : index
    %8 = vector.load %arg7[%c0_6, %c0_7] : memref<16x8xf32, #tpu.memory_space<vmem>>, vector<16x8xf32>
    tpu.vector_store %arg7[%c0_6, %c0_7], %7 {strides = array<i32>} : memref<16x8xf32, #tpu.memory_space<vmem>>, vector<16x8xf32>,
    %c0_i32_8 = arith.constant 0 : i32
    %9 = arith.cmpi eq, %arg1, %c0_i32_8 : i32
    %10 = arith.extui %9 : i1 to i32
    %c0_i32_9 = arith.constant 0 : i32
    %11 = arith.cmpi ne, %10, %c0_i32_9 : i32
    scf.if %11 {
      %c0_10 = arith.constant 0 : index
      %c0_11 = arith.constant 0 : index
      %12 = vector.load %arg7[%c0_10, %c0_11] : memref<16x8xf32, #tpu.memory_space<vmem>>, vector<16x8xf32>
      %13 = arith.truncf %12 : vector<16x8xf32> to vector<16x8xbf16>
      %c0_12 = arith.constant 0 : index
      %c0_13 = arith.constant 0 : index
      %14 = vector.load %arg4[%c0_12, %c0_13] : memref<8x128xbf16, #tpu.memory_space<vmem>>, vector<8x128xbf16>
      %cst_14 = arith.constant dense<0.000000e+00> : vector<16x128xf32>
      %15 = tpu.matmul %13, %14, %cst_14 {dimension_numbers = #tpu.dot_dimension_numbers<[1], [0], [0], [1], [0, 0, 1, 1], [], []>} : vector<16x8xbf16>, vector<8x128xbf16>, vector<16x128xf32> -> vector<16x128xf32>
      %c0_15 = arith.constant 0 : index
      %c0_16 = arith.constant 0 : index
      %16 = vector.load %arg5[%c0_15, %c0_16] : memref<1x128xf32, #tpu.memory_space<vmem>>, vector<1x128xf32>
      %17 = vector.broadcast %16 : vector<1x128xf32> to vector<16x128xf32>
      %18 = arith.addf %15, %17 : vector<16x128xf32>
      %cst_17 = arith.constant 0.000000e+00 : f32
      %19 = vector.broadcast %cst_17 : f32 to vector<16x128xf32>
      %20 = arith.maximumf %18, %19 : vector<16x128xf32>
      %21 = arith.truncf %20 : vector<16x128xf32> to vector<16x128xbf16>
      %c0_18 = arith.constant 0 : index
      %c0_19 = arith.constant 0 : index
      %22 = vector.load %arg6[%c0_18, %c0_19] : memref<16x128xbf16, #tpu.memory_space<vmem>>, vector<16x128xbf16>
      tpu.vector_store %arg6[%c0_18, %c0_19], %21 {strides = array<i32>} : memref<16x128xbf16, #tpu.memory_space<vmem>>, vector<16x128xbf16>,
    } else {
    }
    return
  }
  func.func @transform_0(%arg0: i32, %arg1: i32) -> (i32, i32) {
    %c0_i32 = arith.constant 0 : i32
    return %arg0, %arg1 : i32, i32
  }
  func.func @transform_1(%arg0: i32, %arg1: i32) -> (i32, i32) {
    %c0_i32 = arith.constant 0 : i32
    %c0_i32_0 = arith.constant 0 : i32
    return %arg1, %c0_i32 : i32, i32
  }
  func.func @transform_2(%arg0: i32, %arg1: i32) -> (i32, i32) {
    %c0_i32 = arith.constant 0 : i32
    %c0_i32_0 = arith.constant 0 : i32
    %c0_i32_1 = arith.constant 0 : i32
    return %c0_i32, %c0_i32_0 : i32, i32
  }
  func.func @transform_3(%arg0: i32, %arg1: i32) -> (i32, i32) {
    %c0_i32 = arith.constant 0 : i32
    %c0_i32_0 = arith.constant 0 : i32
    %c0_i32_1 = arith.constant 0 : i32
    return %c0_i32, %c0_i32_0 : i32, i32
  }
  func.func @transform_4(%arg0: i32, %arg1: i32) -> (i32, i32) {
    %c0_i32 = arith.constant 0 : i32
    %c0_i32_0 = arith.constant 0 : i32
    return %arg0, %c0_i32 : i32, i32
  }
}

module attributes {stable_mosaic.version = 11 : i64} {
  func.func @kernel(%arg0: i32, %arg1: i32, %arg2: memref<16x16xbf16, #tpu.memory_space<vmem>>, %arg3: memref<16x128xbf16, #tpu.memory_space<vmem>>, %arg4: memref<128x128xbf16, #tpu.memory_space<vmem>>, %arg5: memref<1x128xf32, #tpu.memory_space<vmem>>, %arg6: memref<16x128xbf16, #tpu.memory_space<vmem>>, %arg7: memref<16x128xf32, #tpu.memory_space<vmem>>) attributes {dimension_semantics = [#tpu.dimension_semantics<parallel>, #tpu.dimension_semantics<arbitrary>], iteration_bounds = array<i64: 1, 1>, scalar_prefetch = 0 : i64, scratch_operands = 1 : i64, tpu.core_type = #tpu.core_type<tc>, window_params = [{transform_indices = @transform_0, window_bounds = array<i64: 16, 16>}, {transform_indices = @transform_1, window_bounds = array<i64: 16, 128>}, {pipeline_mode = #tpu.pipeline_mode<synchronous>, transform_indices = @transform_2, window_bounds = array<i64: 128, 128>}, {pipeline_mode = #tpu.pipeline_mode<synchronous>, transform_indices = @transform_3, window_bounds = array<i64: 1, 128>}, {transform_indices = @transform_4, window_bounds = array<i64: 16, 128>}]} {
    %c0_i32 = arith.constant 0 : i32
    %0 = arith.cmpi eq, %arg1, %c0_i32 : i32
    %1 = arith.extui %0 : i1 to i32
    %c0_i32_0 = arith.constant 0 : i32
    %2 = arith.cmpi ne, %1, %c0_i32_0 : i32
    scf.if %2 {
      %cst_10 = arith.constant 0.000000e+00 : f32
      %12 = vector.broadcast %cst_10 : f32 to vector<16x128xf32>
      %c0_11 = arith.constant 0 : index
      %c0_12 = arith.constant 0 : index
      %13 = vector.load %arg7[%c0_11, %c0_12] : memref<16x128xf32, #tpu.memory_space<vmem>>, vector<16x128xf32>
      tpu.vector_store %arg7[%c0_11, %c0_12], %12 {strides = array<i32>} : memref<16x128xf32, #tpu.memory_space<vmem>>, vector<16x128xf32>,
    } else {
    }
    %c0 = arith.constant 0 : index
    %c0_1 = arith.constant 0 : index
    %3 = vector.load %arg7[%c0, %c0_1] : memref<16x128xf32, #tpu.memory_space<vmem>>, vector<16x128xf32>
    %c0_2 = arith.constant 0 : index
    %c0_3 = arith.constant 0 : index
    %4 = vector.load %arg2[%c0_2, %c0_3] : memref<16x16xbf16, #tpu.memory_space<vmem>>, vector<16x16xbf16>
    %c0_4 = arith.constant 0 : index
    %c0_5 = arith.constant 0 : index
    %5 = vector.load %arg3[%c0_4, %c0_5] : memref<16x128xbf16, #tpu.memory_space<vmem>>, vector<16x128xbf16>
    %cst = arith.constant dense<0.000000e+00> : vector<16x128xf32>
    %6 = tpu.matmul %4, %5, %cst {dimension_numbers = #tpu.dot_dimension_numbers<[1], [0], [0], [1], [0, 0, 1, 1], [], []>} : vector<16x16xbf16>, vector<16x128xbf16>, vector<16x128xf32> -> vector<16x128xf32>
    %7 = arith.addf %3, %6 : vector<16x128xf32>
    %c0_6 = arith.constant 0 : index
    %c0_7 = arith.constant 0 : index
    %8 = vector.load %arg7[%c0_6, %c0_7] : memref<16x128xf32, #tpu.memory_space<vmem>>, vector<16x128xf32>
    tpu.vector_store %arg7[%c0_6, %c0_7], %7 {strides = array<i32>} : memref<16x128xf32, #tpu.memory_space<vmem>>, vector<16x128xf32>,
    %c0_i32_8 = arith.constant 0 : i32
    %9 = arith.cmpi eq, %arg1, %c0_i32_8 : i32
    %10 = arith.extui %9 : i1 to i32
    %c0_i32_9 = arith.constant 0 : i32
    %11 = arith.cmpi ne, %10, %c0_i32_9 : i32
    scf.if %11 {
      %c0_10 = arith.constant 0 : index
      %c0_11 = arith.constant 0 : index
      %12 = vector.load %arg7[%c0_10, %c0_11] : memref<16x128xf32, #tpu.memory_space<vmem>>, vector<16x128xf32>
      %13 = arith.truncf %12 : vector<16x128xf32> to vector<16x128xbf16>
      %c0_12 = arith.constant 0 : index
      %c0_13 = arith.constant 0 : index
      %14 = vector.load %arg4[%c0_12, %c0_13] : memref<128x128xbf16, #tpu.memory_space<vmem>>, vector<128x128xbf16>
      %cst_14 = arith.constant dense<0.000000e+00> : vector<16x128xf32>
      %15 = tpu.matmul %13, %14, %cst_14 {dimension_numbers = #tpu.dot_dimension_numbers<[1], [0], [0], [1], [0, 0, 1, 1], [], []>} : vector<16x128xbf16>, vector<128x128xbf16>, vector<16x128xf32> -> vector<16x128xf32>
      %c0_15 = arith.constant 0 : index
      %c0_16 = arith.constant 0 : index
      %16 = vector.load %arg5[%c0_15, %c0_16] : memref<1x128xf32, #tpu.memory_space<vmem>>, vector<1x128xf32>
      %17 = vector.broadcast %16 : vector<1x128xf32> to vector<16x128xf32>
      %18 = arith.addf %15, %17 : vector<16x128xf32>
      %cst_17 = arith.constant 0.000000e+00 : f32
      %19 = vector.broadcast %cst_17 : f32 to vector<16x128xf32>
      %20 = arith.maximumf %18, %19 : vector<16x128xf32>
      %21 = arith.truncf %20 : vector<16x128xf32> to vector<16x128xbf16>
      %c0_18 = arith.constant 0 : index
      %c0_19 = arith.constant 0 : index
      %22 = vector.load %arg6[%c0_18, %c0_19] : memref<16x128xbf16, #tpu.memory_space<vmem>>, vector<16x128xbf16>
      tpu.vector_store %arg6[%c0_18, %c0_19], %21 {strides = array<i32>} : memref<16x128xbf16, #tpu.memory_space<vmem>>, vector<16x128xbf16>,
    } else {
    }
    return
  }
  func.func @transform_0(%arg0: i32, %arg1: i32) -> (i32, i32) {
    %c0_i32 = arith.constant 0 : i32
    return %arg0, %arg1 : i32, i32
  }
  func.func @transform_1(%arg0: i32, %arg1: i32) -> (i32, i32) {
    %c0_i32 = arith.constant 0 : i32
    %c0_i32_0 = arith.constant 0 : i32
    return %arg1, %c0_i32 : i32, i32
  }
  func.func @transform_2(%arg0: i32, %arg1: i32) -> (i32, i32) {
    %c0_i32 = arith.constant 0 : i32
    %c0_i32_0 = arith.constant 0 : i32
    %c0_i32_1 = arith.constant 0 : i32
    return %c0_i32, %c0_i32_0 : i32, i32
  }
  func.func @transform_3(%arg0: i32, %arg1: i32) -> (i32, i32) {
    %c0_i32 = arith.constant 0 : i32
    %c0_i32_0 = arith.constant 0 : i32
    %c0_i32_1 = arith.constant 0 : i32
    return %c0_i32, %c0_i32_0 : i32, i32
  }
  func.func @transform_4(%arg0: i32, %arg1: i32) -> (i32, i32) {
    %c0_i32 = arith.constant 0 : i32
    %c0_i32_0 = arith.constant 0 : i32
    return %arg0, %c0_i32 : i32, i32
  }
}

module attributes {stable_mosaic.version = 11 : i64} {
  func.func @kernel(%arg0: i32, %arg1: memref<16x128xbf16, #tpu.memory_space<vmem>>, %arg2: memref<128x128xbf16, #tpu.memory_space<vmem>>, %arg3: memref<1x128xf32, #tpu.memory_space<vmem>>, %arg4: memref<128x128xbf16, #tpu.memory_space<vmem>>, %arg5: memref<1x128xf32, #tpu.memory_space<vmem>>, %arg6: memref<16x128xf32, #tpu.memory_space<vmem>>) attributes {dimension_semantics = [#tpu.dimension_semantics<parallel>], iteration_bounds = array<i64: 1>, scalar_prefetch = 0 : i64, scratch_operands = 0 : i64, tpu.core_type = #tpu.core_type<tc>, window_params = [{transform_indices = @transform_0, window_bounds = array<i64: 16, 128>}, {pipeline_mode = #tpu.pipeline_mode<synchronous>, transform_indices = @transform_1, window_bounds = array<i64: 128, 128>}, {pipeline_mode = #tpu.pipeline_mode<synchronous>, transform_indices = @transform_2, window_bounds = array<i64: 1, 128>}, {pipeline_mode = #tpu.pipeline_mode<synchronous>, transform_indices = @transform_3, window_bounds = array<i64: 128, 128>}, {pipeline_mode = #tpu.pipeline_mode<synchronous>, transform_indices = @transform_4, window_bounds = array<i64: 1, 128>}, {transform_indices = @transform_5, window_bounds = array<i64: 16, 128>}]} {
    %c0 = arith.constant 0 : index
    %c0_0 = arith.constant 0 : index
    %0 = vector.load %arg1[%c0, %c0_0] : memref<16x128xbf16, #tpu.memory_space<vmem>>, vector<16x128xbf16>
    %c0_1 = arith.constant 0 : index
    %c0_2 = arith.constant 0 : index
    %1 = vector.load %arg2[%c0_1, %c0_2] : memref<128x128xbf16, #tpu.memory_space<vmem>>, vector<128x128xbf16>
    %c0_3 = arith.constant 0 : index
    %c0_4 = arith.constant 0 : index
    %2 = vector.load %arg3[%c0_3, %c0_4] : memref<1x128xf32, #tpu.memory_space<vmem>>, vector<1x128xf32>
    %cst = arith.constant dense<0.000000e+00> : vector<16x128xf32>
    %3 = tpu.matmul %0, %1, %cst {dimension_numbers = #tpu.dot_dimension_numbers<[1], [0], [0], [1], [0, 0, 1, 1], [], []>} : vector<16x128xbf16>, vector<128x128xbf16>, vector<16x128xf32> -> vector<16x128xf32>
    %4 = vector.broadcast %2 : vector<1x128xf32> to vector<16x128xf32>
    %5 = arith.addf %3, %4 : vector<16x128xf32>
    %cst_5 = arith.constant 0.000000e+00 : f32
    %6 = vector.broadcast %cst_5 : f32 to vector<16x128xf32>
    %7 = arith.maximumf %5, %6 : vector<16x128xf32>
    %c0_6 = arith.constant 0 : index
    %c0_7 = arith.constant 0 : index
    %8 = vector.load %arg4[%c0_6, %c0_7] : memref<128x128xbf16, #tpu.memory_space<vmem>>, vector<128x128xbf16>
    %c0_8 = arith.constant 0 : index
    %c0_9 = arith.constant 0 : index
    %9 = vector.load %arg5[%c0_8, %c0_9] : memref<1x128xf32, #tpu.memory_space<vmem>>, vector<1x128xf32>
    %10 = arith.truncf %7 : vector<16x128xf32> to vector<16x128xbf16>
    %cst_10 = arith.constant dense<0.000000e+00> : vector<16x128xf32>
    %11 = tpu.matmul %10, %8, %cst_10 {dimension_numbers = #tpu.dot_dimension_numbers<[1], [0], [0], [1], [0, 0, 1, 1], [], []>} : vector<16x128xbf16>, vector<128x128xbf16>, vector<16x128xf32> -> vector<16x128xf32>
    %12 = vector.broadcast %9 : vector<1x128xf32> to vector<16x128xf32>
    %13 = arith.addf %11, %12 : vector<16x128xf32>
    %c0_11 = arith.constant 0 : index
    %c0_12 = arith.constant 0 : index
    %14 = vector.load %arg6[%c0_11, %c0_12] : memref<16x128xf32, #tpu.memory_space<vmem>>, vector<16x128xf32>
    tpu.vector_store %arg6[%c0_11, %c0_12], %13 {strides = array<i32>} : memref<16x128xf32, #tpu.memory_space<vmem>>, vector<16x128xf32>,
    return
  }
  func.func @transform_0(%arg0: i32) -> (i32, i32) {
    %c0_i32 = arith.constant 0 : i32
    %c0_i32_0 = arith.constant 0 : i32
    return %arg0, %c0_i32 : i32, i32
  }
  func.func @transform_1(%arg0: i32) -> (i32, i32) {
    %c0_i32 = arith.constant 0 : i32
    %c0_i32_0 = arith.constant 0 : i32
    %c0_i32_1 = arith.constant 0 : i32
    return %c0_i32, %c0_i32_0 : i32, i32
  }
  func.func @transform_2(%arg0: i32) -> (i32, i32) {
    %c0_i32 = arith.constant 0 : i32
    %c0_i32_0 = arith.constant 0 : i32
    %c0_i32_1 = arith.constant 0 : i32
    return %c0_i32, %c0_i32_0 : i32, i32
  }
  func.func @transform_3(%arg0: i32) -> (i32, i32) {
    %c0_i32 = arith.constant 0 : i32
    %c0_i32_0 = arith.constant 0 : i32
    %c0_i32_1 = arith.constant 0 : i32
    return %c0_i32, %c0_i32_0 : i32, i32
  }
  func.func @transform_4(%arg0: i32) -> (i32, i32) {
    %c0_i32 = arith.constant 0 : i32
    %c0_i32_0 = arith.constant 0 : i32
    %c0_i32_1 = arith.constant 0 : i32
    return %c0_i32, %c0_i32_0 : i32, i32
  }
  func.func @transform_5(%arg0: i32) -> (i32, i32) {
    %c0_i32 = arith.constant 0 : i32
    %c0_i32_0 = arith.constant 0 : i32
    return %arg0, %c0_i32 : i32, i32
  }
}

</mosaic_0001>

<bundles_post_ra>
// kernel: gnn_forward.4
= control target key start
LH: loop header
LB: loop body
LE: loop exit
PB: predicated region body
PF: predicated region fallthrough
CT: control target
= control target key end

     0   :  { %v294_v0 = vmov 0.0   ;;  %vm295_vm0 = vmmov 0   ;;  %vm41_vm1 = vcmask 130048   ;;  %s357_s1 = inlined_call_operand.vmem [shape: bf16[16,128], index: 1, kind: input, shape index: {}]   ;;  %s358_s0 = inlined_call_operand.vmem [shape: bf16[16,16], index: 0, kind: input, shape index: {}]   ;;  %s359_s2 = inlined_call_operand.vmem [shape: bf16[128,128], index: 2, kind: input, shape index: {}]   ;;  %s360_s3 = inlined_call_operand.vmem [shape: f32[1,128], index: 3, kind: input, shape index: {}]   ;;  %s361_s4 = inlined_call_operand.vmem [shape: bf16[16,128], index: 4, kind: output, shape index: {}]  }
   0x1   :  { %256 = vmatprep.subr.bf16.mxu0 %v294_v0  ;;  %v284_v1 = vld [vmem:[%s357_s1] sm:$0xff]   ;;  %258 = vmatprep.mubr.msk.bf16.mxu0 %vm295_vm0, %v294_v0  ;;  %v287_v4 = vld [vmem:[%s359_s2 + $0x8] sm:$0xff]   ;;  %v288_v5 = vld [vmem:[%s359_s2 + $0x10] sm:$0xff]  }
   0x2   :  { %v285_v2 = vld [vmem:[%s358_s0] sm:$0xff]   ;;  %262 = vmatprep.subr.bf16.mxu1 %v294_v0  ;;  %278 = vmatprep.mubr.msk.bf16.mxu1 %vm295_vm0, %v294_v0  ;;  %v289_v6 = vld [vmem:[%s359_s2 + $0x18] sm:$0xff]   ;;  %v291_v8 = vld [vmem:[%s359_s2 + $0x28] sm:$0xff]  }
   0x3   :  { %257 = vmatpush3.bf16.msra.mxu0 %v284_v1  ;;  %v286_v3 = vld [vmem:[%s359_s2] sm:$0xff]   ;;  %v292_v9 = vld [vmem:[%s359_s2 + $0x30] sm:$0xff]   ;;  %v293_v10 = vld [vmem:[%s359_s2 + $0x38] sm:$0xff]  }
   0x4   :  { %263 = vmatpush3.bf16.msra.mxu1 %v286_v3  ;;  %v290_v7 = vld [vmem:[%s359_s2 + $0x20] sm:$0xff]  }
   0x5   :  { %264 = vmatprep.subr.bf16.mxu1 %v294_v0  ;;  %v227_v16 = vld [vmem:[%s360_s3] ss:$0 sm:$0xff] }
   0x6   :  { %259 = vmatmul.mubr.msk.bf16.vlgmr.msra.gmra.mrb[0].mxu0 %vm41_vm1, %v285_v2 }
   0x8   :  { %265 = vmatpush3.bf16.msra.mxu1 %v287_v4 }
   0x9   :  { %266 = vmatprep.subr.bf16.mxu1 %v294_v0 }
   0xc   :  { %267 = vmatpush3.bf16.msra.mxu1 %v288_v5 }
   0xd   :  { %268 = vmatprep.subr.bf16.mxu1 %v294_v0 }
  0x10   :  { %269 = vmatpush3.bf16.msra.mxu1 %v289_v6 }
  0x11   :  { %270 = vmatprep.subr.bf16.mxu1 %v294_v0 }
  0x14   :  { %271 = vmatpush3.bf16.msra.mxu1 %v290_v7 }
  0x15   :  { %272 = vmatprep.subr.bf16.mxu1 %v294_v0 }
  0x18   :  { %273 = vmatpush3.bf16.msra.mxu1 %v291_v8 }
  0x19   :  { %274 = vmatprep.subr.bf16.mxu1 %v294_v0 }
  0x1c   :  { %275 = vmatpush3.bf16.msra.mxu1 %v292_v9 }
  0x1d   :  { %276 = vmatprep.subr.bf16.mxu1 %v294_v0 }
  0x20   :  { %277 = vmatpush3.bf16.msra.mxu1 %v293_v10 }
  0xd9   :  { %v79_v11 = vpop.f32.mrb[0].mxu0 }
  0xda   :  { %v260_v12 = vpop.f32.mrb[1].mxu0 }
  0xdb   :  { %v82_v13 = vpop.f32.mrb[2].mxu0 }
  0xdc   :  { %v95_v14 = vpack.c.bf16 %v82_v13, %v79_v11  ;;  %v261_v15 = vpop.f32.mrb[3].mxu0 }
  0xde   :  { %279 = vmatmul.mubr.bf16.vlgmr.msra.gmra.mrb[0].mxu1 %v95_v14 }
 0x1b1   :  { %v201_v17 = vpop.f32.mrb[0].mxu1 }
 0x1b2   :  { %v202_v18 = vadd.f32 %v227_v16, %v201_v17  ;;  %v280_v19 = vpop.f32.mrb[1].mxu1 }
 0x1b3   :  { %v204_v20 = vpop.f32.mrb[2].mxu1 }
 0x1b4   :  { %v205_v21 = vadd.f32 %v227_v16, %v204_v20  ;;  %v281_v22 = vpop.f32.mrb[3].mxu1  ;;  %v208_v23 = vmax.f32 %v202_v18, 0.0 }
 0x1b6   :  { %v209_v24 = vmax.f32 %v205_v21, 0.0 }
 0x1b8   :  { %v243_v25 = vpack.c.bf16 %v209_v24, %v208_v23 }
 0x1ba   :  { %244 = vst [vmem:[%s361_s4] sm:$0xff] %v243_v25  }

// kernel: gnn_forward.3
= control target key start
LH: loop header
LB: loop body
LE: loop exit
PB: predicated region body
PF: predicated region fallthrough
CT: control target
= control target key end

     0   :  { %vm22_vm0 = vcmask 64512   ;;  %v204_v0 = vmov 0.0   ;;  %vm205_vm1 = vmmov 0   ;;  %vm42_vm2 = vcmask 130048   ;;  %s251_s1 = inlined_call_operand.vmem [shape: bf16[16,8], index: 1, kind: input, shape index: {}]   ;;  %s252_s0 = inlined_call_operand.vmem [shape: bf16[16,16], index: 0, kind: input, shape index: {}]   ;;  %s253_s2 = inlined_call_operand.vmem [shape: bf16[8,128], index: 2, kind: input, shape index: {}]   ;;  %s254_s3 = inlined_call_operand.vmem [shape: f32[1,128], index: 3, kind: input, shape index: {}]   ;;  %s255_s4 = inlined_call_operand.vmem [shape: bf16[16,128], index: 4, kind: output, shape index: {}]  }
   0x1   :  { %188 = vmatprep.subr.bf16.mxu0 %v204_v0  ;;  %v202_v1 = vld [vmem:[%s251_s1] sm:$0xff]   ;;  %190 = vmatprep.mubr.msk.bf16.mxu0 %vm205_vm1, %v204_v0  ;;  %23 = vst.msk [vmem:[#allocation2] sm:$0xff] %vm22_vm0, %v204_v0  ;;  %24 = vst.msk [vmem:[#allocation2 + $0x8] sm:$0xff] %vm22_vm0, %v204_v0  ;;  %vm109_vm3 = vcmask 1043456  }
   0x2   :  { %v203_v2 = vld [vmem:[%s252_s0] sm:$0xff]   ;;  %194 = vmatprep.subr.bf16.mxu1 %v204_v0  ;;  %196 = vmatprep.mubr.msk.bf16.mxu1 %vm205_vm1, %v204_v0 }
   0x3   :  { %189 = vmatpush3.bf16.msra.mxu0 %v202_v1  ;;  %v98_v3 = vld [vmem:[%s253_s2] sm:$0xf] }
   0x4   :  { %v111_v4 = vsel %vm109_vm3, %v98_v3, 0  ;;  %v173_v16 = vld [vmem:[%s254_s3] ss:$0 sm:$0xff] }
   0x5   :  { %195 = vmatpush3.bf16.msra.mxu1 %v111_v4 }
   0x6   :  { %191 = vmatmul.mubr.msk.bf16.vlgmr.msra.gmra.mrb[0].mxu0 %vm42_vm2, %v203_v2 }
   0x8   :  { %v25_v5 = vld [vmem:[#allocation2] sm:$0xff]  ;;  %v26_v7 = vld [vmem:[#allocation2 + $0x8] sm:$0xff] }
  0xd9   :  { %v80_v6 = vpop.f32.mrb[0].mxu0 }
  0xda   :  { %v87_v8 = vadd.f32 %v80_v6, %v25_v5  ;;  %v192_v9 = vpop.f32.mrb[1].mxu0 }
  0xdb   :  { %v83_v10 = vpop.f32.mrb[2].mxu0 }
  0xdc   :  { %90 = vst.msk [vmem:[#allocation2] sm:$0xff] %vm22_vm0, %v87_v8  ;;  %v88_v11 = vadd.f32 %v83_v10, %v26_v7  ;;  %v193_v12 = vpop.f32.mrb[3].mxu0 }
  0xde   :  { %91 = vst.msk [vmem:[#allocation2 + $0x8] sm:$0xff] %vm22_vm0, %v88_v11 }
  0xe3   :  { %v95_v13 = vld [vmem:[#allocation2] sm:$0xff] }
  0xe5   :  { %v96_v14 = vld [vmem:[#allocation2 + $0x8] sm:$0xff] }
  0xe6   :  { %v97_v15 = vpack.c.bf16 %v96_v14, %v95_v13 }
  0xe8   :  { %197 = vmatmul.mubr.msk.bf16.vlgmr.msra.gmra.mrb[0].mxu1 %vm22_vm0, %v97_v15 }
 0x1bb   :  { %v147_v17 = vpop.f32.mrb[0].mxu1 }
 0x1bc   :  { %v148_v18 = vadd.f32 %v173_v16, %v147_v17  ;;  %v198_v19 = vpop.f32.mrb[1].mxu1 }
 0x1bd   :  { %v150_v20 = vpop.f32.mrb[2].mxu1 }
 0x1be   :  { %v151_v21 = vadd.f32 %v173_v16, %v150_v20  ;;  %v199_v22 = vpop.f32.mrb[3].mxu1  ;;  %v154_v23 = vmax.f32 %v148_v18, 0.0 }
 0x1c0   :  { %v155_v24 = vmax.f32 %v151_v21, 0.0 }
 0x1c2   :  { %v182_v25 = vpack.c.bf16 %v155_v24, %v154_v23 }
 0x1c4   :  { %183 = vst [vmem:[%s255_s4] sm:$0xff] %v182_v25  }

// kernel: gnn_forward.5
= control target key start
LH: loop header
LB: loop body
LE: loop exit
PB: predicated region body
PF: predicated region fallthrough
CT: control target
= control target key end

     0   :  { %v358_v0 = vmov 0.0   ;;  %vm359_vm0 = vmmov 0   ;;  %s453_s1 = inlined_call_operand.vmem [shape: bf16[128,128], index: 1, kind: input, shape index: {}]   ;;  %s454_s3 = inlined_call_operand.vmem [shape: bf16[128,128], index: 3, kind: input, shape index: {}]   ;;  %s455_s0 = inlined_call_operand.vmem [shape: bf16[16,128], index: 0, kind: input, shape index: {}]   ;;  %s456_s2 = inlined_call_operand.vmem [shape: f32[1,128], index: 2, kind: input, shape index: {}]   ;;  %s457_s4 = inlined_call_operand.vmem [shape: f32[1,128], index: 4, kind: input, shape index: {}]   ;;  %s458_s5 = inlined_call_operand.vmem [shape: f32[16,128], index: 5, kind: output, shape index: {}]  }
   0x1   :  { %299 = vmatprep.subr.bf16.mxu0 %v358_v0  ;;  %v341_v1 = vld [vmem:[%s453_s1] sm:$0xff]   ;;  %315 = vmatprep.mubr.msk.bf16.mxu0 %vm359_vm0, %v358_v0  ;;  %v342_v2 = vld [vmem:[%s453_s1 + $0x8] sm:$0xff]   ;;  %v343_v3 = vld [vmem:[%s453_s1 + $0x10] sm:$0xff]  }
   0x2   :  { %319 = vmatprep.subr.bf16.mxu1 %v358_v0  ;;  %335 = vmatprep.mubr.msk.bf16.mxu1 %vm359_vm0, %v358_v0  ;;  %v350_v4 = vld [vmem:[%s454_s3] sm:$0xff]   ;;  %v344_v5 = vld [vmem:[%s453_s1 + $0x18] sm:$0xff]   ;;  %v351_v6 = vld [vmem:[%s454_s3 + $0x8] sm:$0xff]  }
   0x3   :  { %300 = vmatpush3.bf16.msra.mxu0 %v341_v1  ;;  %320 = vmatpush3.bf16.msra.mxu1 %v350_v4  ;;  %v345_v7 = vld [vmem:[%s453_s1 + $0x20] sm:$0xff]   ;;  %v352_v8 = vld [vmem:[%s454_s3 + $0x10] sm:$0xff]   ;;  %v346_v9 = vld [vmem:[%s453_s1 + $0x28] sm:$0xff]  }
   0x4   :  { %301 = vmatprep.subr.bf16.mxu0 %v358_v0  ;;  %321 = vmatprep.subr.bf16.mxu1 %v358_v0  ;;  %v353_v10 = vld [vmem:[%s454_s3 + $0x18] sm:$0xff]   ;;  %v347_v11 = vld [vmem:[%s453_s1 + $0x30] sm:$0xff]   ;;  %v354_v12 = vld [vmem:[%s454_s3 + $0x20] sm:$0xff]  }
   0x5   :  { %v348_v13 = vld [vmem:[%s453_s1 + $0x38] sm:$0xff]   ;;  %v355_v14 = vld [vmem:[%s454_s3 + $0x28] sm:$0xff]   ;;  %v349_v15 = vld [vmem:[%s455_s0] sm:$0xff]  }
   0x6   :  { %v356_v16 = vld [vmem:[%s454_s3 + $0x30] sm:$0xff]   ;;  %v357_v17 = vld [vmem:[%s454_s3 + $0x38] sm:$0xff]   ;;  %v262_v18 = vld [vmem:[%s456_s2] ss:$0 sm:$0xff] }
   0x7   :  { %302 = vmatpush3.bf16.msra.mxu0 %v342_v2  ;;  %322 = vmatpush3.bf16.msra.mxu1 %v351_v6  ;;  %v272_v28 = vld [vmem:[%s457_s4] ss:$0 sm:$0xff] }
   0x8   :  { %303 = vmatprep.subr.bf16.mxu0 %v358_v0  ;;  %323 = vmatprep.subr.bf16.mxu1 %v358_v0 }
   0xb   :  { %304 = vmatpush3.bf16.msra.mxu0 %v343_v3  ;;  %324 = vmatpush3.bf16.msra.mxu1 %v352_v8 }
   0xc   :  { %305 = vmatprep.subr.bf16.mxu0 %v358_v0  ;;  %325 = vmatprep.subr.bf16.mxu1 %v358_v0 }
   0xf   :  { %306 = vmatpush3.bf16.msra.mxu0 %v344_v5  ;;  %326 = vmatpush3.bf16.msra.mxu1 %v353_v10 }
  0x10   :  { %307 = vmatprep.subr.bf16.mxu0 %v358_v0  ;;  %327 = vmatprep.subr.bf16.mxu1 %v358_v0 }
  0x13   :  { %308 = vmatpush3.bf16.msra.mxu0 %v345_v7  ;;  %328 = vmatpush3.bf16.msra.mxu1 %v354_v12 }
  0x14   :  { %309 = vmatprep.subr.bf16.mxu0 %v358_v0  ;;  %329 = vmatprep.subr.bf16.mxu1 %v358_v0 }
  0x17   :  { %310 = vmatpush3.bf16.msra.mxu0 %v346_v9  ;;  %330 = vmatpush3.bf16.msra.mxu1 %v355_v14 }
  0x18   :  { %311 = vmatprep.subr.bf16.mxu0 %v358_v0  ;;  %331 = vmatprep.subr.bf16.mxu1 %v358_v0 }
  0x1b   :  { %312 = vmatpush3.bf16.msra.mxu0 %v347_v11  ;;  %332 = vmatpush3.bf16.msra.mxu1 %v356_v16 }
  0x1c   :  { %313 = vmatprep.subr.bf16.mxu0 %v358_v0  ;;  %333 = vmatprep.subr.bf16.mxu1 %v358_v0 }
  0x1f   :  { %314 = vmatpush3.bf16.msra.mxu0 %v348_v13  ;;  %334 = vmatpush3.bf16.msra.mxu1 %v357_v17 }
  0x22   :  { %316 = vmatmul.mubr.bf16.vlgmr.msra.gmra.mrb[0].mxu0 %v349_v15 }
  0xf5   :  { %v134_v19 = vpop.f32.mrb[0].mxu0 }
  0xf6   :  { %v135_v20 = vadd.f32 %v262_v18, %v134_v19  ;;  %v317_v21 = vpop.f32.mrb[1].mxu0 }
  0xf7   :  { %v137_v22 = vpop.f32.mrb[2].mxu0 }
  0xf8   :  { %v138_v23 = vadd.f32 %v262_v18, %v137_v22  ;;  %v318_v24 = vpop.f32.mrb[3].mxu0  ;;  %v141_v25 = vmax.f32 %v135_v20, 0.0 }
  0xfa   :  { %v142_v26 = vmax.f32 %v138_v23, 0.0 }
  0xfc   :  { %v160_v27 = vpack.c.bf16 %v142_v26, %v141_v25 }
  0xfe   :  { %336 = vmatmul.mubr.bf16.vlgmr.msra.gmra.mrb[0].mxu1 %v160_v27 }
 0x1d1   :  { %v249_v29 = vpop.f32.mrb[0].mxu1 }
 0x1d2   :  { %v250_v30 = vadd.f32 %v272_v28, %v249_v29  ;;  %v337_v31 = vpop.f32.mrb[1].mxu1 }
 0x1d3   :  { %v252_v32 = vpop.f32.mrb[2].mxu1 }
 0x1d4   :  { %256 = vst [vmem:[%s458_s5] sm:$0xff] %v250_v30  ;;  %v253_v33 = vadd.f32 %v272_v28, %v252_v32  ;;  %v338_v34 = vpop.f32.mrb[3].mxu1 }
 0x1d6   :  { %257 = vst [vmem:[%s458_s5 + $0x8] sm:$0xff] %v253_v33 }

</bundles_post_ra>
